<compile_context>
chip_gen: v5e
topology: v5e:2x2
jax: 0.10.0
libtpu: 0.0.40
codegen_flags: <defaults>
</compile_context>

<pallas_src>
import jax
import jax.numpy as jnp
from jax.experimental import pallas as pl
from jax.experimental.pallas import tpu as pltpu

SQRT_2_OVER_PI = 0.7978845608028654
GELU_C = 0.044715

CP_63 = 128            # 63 channels padded to one lane tile
CP_193 = 256           # 193 channels padded to two lane tiles
TILE_M_CAP = 1024      # rows (N*Ho*Wo) per grid step
VMEM_LIMIT = 48 * 1024 * 1024   # explicit; safe on v5e/v6e (128 MiB) and v7x (64 MiB)


def _round_up(x, m):
    return (x + m - 1) // m * m


def _gelu_tanh(v):
    # Exact op sequence used in the PyTorch forward (v4..v12 pattern), in f32.
    v4 = v * 0.5
    v5 = v * v
    v6 = v5 * v
    v7 = v6 * GELU_C
    v8 = v + v7
    v9 = v8 * SQRT_2_OVER_PI
    v10 = jnp.tanh(v9)
    v11 = v10 + 1.0
    return v4 * v11


# ----------------------------- Pallas kernels ------------------------------

def _matmul_bias_kernel(x_ref, w_ref, b_ref, o_ref):
    # conv5 as a single K=12 matmul over the concatenated 2x2 taps.
    acc = jnp.dot(x_ref[...], w_ref[...], preferred_element_type=jnp.float32)
    o_ref[...] = (acc + b_ref[...]).astype(o_ref.dtype)


def _fused_c678_kernel(x_ref, w6_ref, b6_ref, w7_ref, b7_ref, w8_ref, b8_ref,
                       o_ref):
    # x: (tile_m, 512) bf16 = concatenated 2x2 taps of v1 (conv6 input).
    # o = gelu_tanh( (v2 + gelu_tanh(v2 @ w7 + b7)) @ w8 + b8 ),
    #     v2 = x @ w6 + b6  (single K=512 MXU matmul, f32 accumulation).
    x = x_ref[...]
    v2 = jnp.dot(x, w6_ref[...], preferred_element_type=jnp.float32) + b6_ref[...]
    v3 = jnp.dot(v2.astype(jnp.bfloat16), w7_ref[...],
                 preferred_element_type=jnp.float32) + b7_ref[...]
    v13 = v2 + _gelu_tanh(v3)                       # f32 residual (matches reference)
    v14 = jnp.dot(v13.astype(jnp.bfloat16), w8_ref[...],
                  preferred_element_type=jnp.float32) + b8_ref[...]
    o_ref[...] = _gelu_tanh(v14).astype(o_ref.dtype)


# ------------------------------ wrappers ------------------------------------

def _phase_concat(x_nhwc):
    """Pad (pad=1) and gather the four stride-2 phase taps of a 2x2/stride-2
    conv, concatenated on the channel axis -> (N*Ho*Wo, 4*C).

    Single XLA fusion producing one buffer (one DMA stream into the kernel),
    tap order (kh, kw) matching the weight layout built in prepare_params().
    """
    N, H, W, C = x_nhwc.shape
    Ho, Wo = H // 2 + 1, W // 2 + 1
    xp = jnp.pad(x_nhwc, ((0, 0), (1, 1), (1, 1), (0, 0)))
    taps = [xp[:, kh:kh + 2 * (Ho - 1) + 1:2, kw:kw + 2 * (Wo - 1) + 1:2, :]
            for kh in range(2) for kw in range(2)]
    x_cat = jnp.concatenate(taps, axis=-1).reshape(N * Ho * Wo, 4 * C)
    return x_cat, (N, Ho, Wo)


def conv5_pallas(x_concat, w, b):
    """conv5 (Conv2d(3, 63, 2, stride=2, padding=1)) as one (M,12)x(12,128) matmul."""
    M, K = x_concat.shape
    Cp = w.shape[-1]
    tile_m = min(TILE_M_CAP, _round_up(M, 16))
    cost = pl.CostEstimate(
        flops=2 * M * K * Cp,
        transcendentals=0,
        bytes_accessed=M * K * 2 + K * Cp * 2 + Cp * 4 + M * Cp * 2,
    )
    return pl.pallas_call(
        _matmul_bias_kernel,
        out_shape=jax.ShapeDtypeStruct((M, Cp), jnp.bfloat16),
        grid=(pl.cdiv(M, tile_m),),
        in_specs=[pl.BlockSpec((tile_m, K), lambda i: (i, 0)),
                  pl.BlockSpec((K, Cp), lambda i: (0, 0)),     # resident weight
                  pl.BlockSpec((1, Cp), lambda i: (0, 0))],    # resident bias
        out_specs=pl.BlockSpec((tile_m, Cp), lambda i: (i, 0)),
        compiler_params=pltpu.CompilerParams(
            dimension_semantics=("parallel",),
            vmem_limit_bytes=VMEM_LIMIT),
        cost_estimate=cost,
    )(x_concat, w, b)


def fused_conv678(x_concat, prep):
    """Fused conv6 (2x2/s2/p1) + conv7 (1x1) + residual + conv8 (1x1) + GELUs."""
    M, K = x_concat.shape           # K = 4 * CP_63 = 512
    Cp7 = prep["w7"].shape[-1]      # 128
    Cp8 = prep["w8"].shape[-1]      # 256
    tile_m = min(TILE_M_CAP, _round_up(M, 16))
    cost = pl.CostEstimate(
        flops=2 * M * (K * Cp7 + Cp7 * Cp7 + Cp7 * Cp8),
        transcendentals=M * (Cp7 + Cp8),
        bytes_accessed=(M * K * 2 + K * Cp7 * 2 + Cp7 * Cp7 * 2 + Cp7 * Cp8 * 2
                        + (2 * Cp7 + Cp8) * 4 + M * Cp8 * 2),
    )
    return pl.pallas_call(
        _fused_c678_kernel,
        out_shape=jax.ShapeDtypeStruct((M, Cp8), jnp.bfloat16),
        grid=(pl.cdiv(M, tile_m),),
        in_specs=[pl.BlockSpec((tile_m, K), lambda i: (i, 0)),
                  pl.BlockSpec((K, Cp7), lambda i: (0, 0)),    # w6 (512,128) resident
                  pl.BlockSpec((1, Cp7), lambda i: (0, 0)),    # b6
                  pl.BlockSpec((Cp7, Cp7), lambda i: (0, 0)),  # w7
                  pl.BlockSpec((1, Cp7), lambda i: (0, 0)),    # b7
                  pl.BlockSpec((Cp7, Cp8), lambda i: (0, 0)),  # w8
                  pl.BlockSpec((1, Cp8), lambda i: (0, 0))],   # b8
        out_specs=pl.BlockSpec((tile_m, Cp8), lambda i: (i, 0)),
        compiler_params=pltpu.CompilerParams(
            dimension_semantics=("parallel",),
            vmem_limit_bytes=VMEM_LIMIT),
        cost_estimate=cost,
    )(x_concat, prep["w6"], prep["b6"], prep["w7"], prep["b7"],
      prep["w8"], prep["b8"])


# ------------------------------ parameters ---------------------------------

def init_params(key):
    """Deterministic init mimicking PyTorch Conv2d default U(-1/sqrt(fan_in), ...)."""
    def conv_params(k, cout, cin, ksz):
        k1, k2 = jax.random.split(k)
        bound = 1.0 / (cin * ksz * ksz) ** 0.5
        w = jax.random.uniform(k1, (cout, cin, ksz, ksz), jnp.float32, -bound, bound)
        b = jax.random.uniform(k2, (cout,), jnp.float32, -bound, bound)
        return w, b

    k5, k6, k7, k8 = jax.random.split(key, 4)
    p = {}
    p["w5"], p["b5"] = conv_params(k5, 63, 3, 2)
    p["w6"], p["b6"] = conv_params(k6, 63, 63, 2)
    p["w7"], p["b7"] = conv_params(k7, 63, 63, 1)
    p["w8"], p["b8"] = conv_params(k8, 193, 63, 1)
    return p


def prepare_params(p):
    """One-time conversion to matmul layout (off the hot path): concatenate the
    2x2 taps along K, pad channels to lane multiples, cast weights to bf16.
    All padding is zero so padded activation channels stay exactly zero."""

    def prep_2x2(w, b, cin_pad, cout_pad):
        cout, cin = w.shape[0], w.shape[1]
        # (Cout, Cin, KH, KW) -> (KH, KW, Cin_pad, Cout_pad) -> (4*Cin_pad, Cout_pad)
        wm = jnp.transpose(w, (2, 3, 1, 0))
        wm = jnp.pad(wm, ((0, 0), (0, 0), (0, cin_pad - cin), (0, cout_pad - cout)))
        wm = wm.reshape(4 * cin_pad, cout_pad)
        br = jnp.pad(b, (0, cout_pad - cout)).reshape(1, cout_pad)
        return wm.astype(jnp.bfloat16), br.astype(jnp.float32)

    def prep_1x1(w, b, cin_pad, cout_pad):
        cout, cin = w.shape[0], w.shape[1]
        wm = jnp.pad(w.reshape(cout, cin).T,
                     ((0, cin_pad - cin), (0, cout_pad - cout)))
        br = jnp.pad(b, (0, cout_pad - cout)).reshape(1, cout_pad)
        return wm.astype(jnp.bfloat16), br.astype(jnp.float32)

    prep = {}
    prep["w5"], prep["b5"] = prep_2x2(p["w5"], p["b5"], 3, CP_63)      # (12, 128)
    prep["w6"], prep["b6"] = prep_2x2(p["w6"], p["b6"], CP_63, CP_63)  # (512, 128)
    prep["w7"], prep["b7"] = prep_1x1(p["w7"], p["b7"], CP_63, CP_63)  # (128, 128)
    prep["w8"], prep["b8"] = prep_1x1(p["w8"], p["b8"], CP_63, CP_193) # (128, 256)
    return prep


# ------------------------------ model forward ------------------------------

def model_forward(x_nchw, prep):
    x = jnp.transpose(x_nchw, (0, 2, 3, 1)).astype(jnp.bfloat16)   # NCHW -> NHWC bf16
    N = x.shape[0]

    # conv5: single K=12 matmul over the concatenated taps.
    x5, (_, Ho1, Wo1) = _phase_concat(x)                            # (M1, 12)
    v1 = conv5_pallas(x5, prep["w5"], prep["b5"])                   # (M1, 128) bf16
    v1_nhwc = v1.reshape(N, Ho1, Wo1, CP_63)

    # fused conv6 + conv7 + residual + conv8 + GELUs (v2/v13 never hit HBM).
    x6, (_, Ho2, Wo2) = _phase_concat(v1_nhwc)                      # (M2, 512) bf16
    v23p = fused_conv678(x6, prep)                                  # (M2, 256) bf16
    v23 = v23p.reshape(N, Ho2, Wo2, CP_193)

    # TODO(synk): v24 = v13 + v23 (63 vs 193 channels) and conv5(v24) are
    # shape-invalid in the reference module; v24..v49 omitted.
    # Single tail pass: NHWC(256, padded, bf16) -> NCHW(193, f32).
    return jnp.transpose(v23, (0, 3, 1, 2))[:, :193].astype(jnp.float32)


# -------------------------- pure-JAX reference -----------------------------

def _ref_conv(x_nchw, w, b, stride, pad):
    y = jax.lax.conv_general_dilated(
        x_nchw, w, (stride, stride), [(pad, pad), (pad, pad)],
        dimension_numbers=("NCHW", "OIHW", "NCHW"))
    return y + b.reshape(1, -1, 1, 1)


def reference_forward(x_nchw, p):
    v1 = _ref_conv(x_nchw, p["w5"], p["b5"], 2, 1)
    v2 = _ref_conv(v1, p["w6"], p["b6"], 2, 1)
    v3 = _ref_conv(v2, p["w7"], p["b7"], 1, 0)
    v13 = v2 + _gelu_tanh(v3)
    v14 = _ref_conv(v13, p["w8"], p["b8"], 1, 0)
    v23 = _gelu_tanh(v14)
    return v23


# ----------------------------------- main -----------------------------------

if __name__ == "__main__":
    key = jax.random.PRNGKey(0)
    kx, kp = jax.random.split(key)

    # Small input consistent with the module (original was (1, 3, 400, 400)).
    x4 = jax.random.normal(kx, (1, 3, 16, 16), jnp.float32)
    params = init_params(kp)
    prep = prepare_params(params)   # one-time weight layout conversion

    fwd = jax.jit(model_forward)
    out = jax.block_until_ready(fwd(x4, prep))

    ref = reference_forward(x4, params)
    max_diff = float(jnp.max(jnp.abs(out - ref)))
    assert out.shape == (1, 193, 5, 5), out.shape
    # bf16 MXU operands / bf16 writeback with f32 accumulation and f32 residual:
    # small drift vs the f32 reference (~1e-2 worst case at these magnitudes).
    assert max_diff < 3e-2, f"mismatch vs reference: {max_diff}"

    print("KERNEL_OK")
</pallas_src>

<mosaic_0001>
module attributes {stable_mosaic.version = 11 : i64} {
  func.func @_matmul_bias_kernel(%arg0: i32, %arg1: memref<96x12xbf16, #tpu.memory_space<vmem>>, %arg2: memref<12x128xbf16, #tpu.memory_space<vmem>>, %arg3: memref<1x128xf32, #tpu.memory_space<vmem>>, %arg4: memref<96x128xbf16, #tpu.memory_space<vmem>>) attributes {dimension_semantics = [#tpu.dimension_semantics<parallel>], iteration_bounds = array<i64: 1>, scalar_prefetch = 0 : i64, scratch_operands = 0 : i64, tpu.core_type = #tpu.core_type<tc>, window_params = [{transform_indices = @transform_0, window_bounds = array<i64: 96, 12>}, {pipeline_mode = #tpu.pipeline_mode<synchronous>, transform_indices = @transform_1, window_bounds = array<i64: 12, 128>}, {pipeline_mode = #tpu.pipeline_mode<synchronous>, transform_indices = @transform_2, window_bounds = array<i64: 1, 128>}, {transform_indices = @transform_3, window_bounds = array<i64: 96, 128>}]} {
    %c0 = arith.constant 0 : index
    %c0_0 = arith.constant 0 : index
    %0 = vector.load %arg1[%c0, %c0_0] : memref<96x12xbf16, #tpu.memory_space<vmem>>, vector<96x12xbf16>
    %c0_1 = arith.constant 0 : index
    %c0_2 = arith.constant 0 : index
    %1 = vector.load %arg2[%c0_1, %c0_2] : memref<12x128xbf16, #tpu.memory_space<vmem>>, vector<12x128xbf16>
    %cst = arith.constant dense<0.000000e+00> : vector<96x128xf32>
    %2 = tpu.matmul %0, %1, %cst {dimension_numbers = #tpu.dot_dimension_numbers<[1], [0], [0], [1], [0, 0, 1, 1], [], []>} : vector<96x12xbf16>, vector<12x128xbf16>, vector<96x128xf32> -> vector<96x128xf32>
    %c0_3 = arith.constant 0 : index
    %c0_4 = arith.constant 0 : index
    %3 = vector.load %arg3[%c0_3, %c0_4] : memref<1x128xf32, #tpu.memory_space<vmem>>, vector<1x128xf32>
    %4 = vector.broadcast %3 : vector<1x128xf32> to vector<96x128xf32>
    %5 = arith.addf %2, %4 : vector<96x128xf32>
    %6 = arith.truncf %5 : vector<96x128xf32> to vector<96x128xbf16>
    %c0_5 = arith.constant 0 : index
    %c0_6 = arith.constant 0 : index
    %7 = vector.load %arg4[%c0_5, %c0_6] : memref<96x128xbf16, #tpu.memory_space<vmem>>, vector<96x128xbf16>
    tpu.vector_store %arg4[%c0_5, %c0_6], %6 {strides = array<i32>} : memref<96x128xbf16, #tpu.memory_space<vmem>>, vector<96x128xbf16>,
    return
  }
  func.func @transform_0(%arg0: i32) -> (i32, i32) {
    %c0_i32 = arith.constant 0 : i32
    %c0_i32_0 = arith.constant 0 : i32
    return %arg0, %c0_i32 : i32, i32
  }
  func.func @transform_1(%arg0: i32) -> (i32, i32) {
    %c0_i32 = arith.constant 0 : i32
    %c0_i32_0 = arith.constant 0 : i32
    %c0_i32_1 = arith.constant 0 : i32
    return %c0_i32, %c0_i32_0 : i32, i32
  }
  func.func @transform_2(%arg0: i32) -> (i32, i32) {
    %c0_i32 = arith.constant 0 : i32
    %c0_i32_0 = arith.constant 0 : i32
    %c0_i32_1 = arith.constant 0 : i32
    return %c0_i32, %c0_i32_0 : i32, i32
  }
  func.func @transform_3(%arg0: i32) -> (i32, i32) {
    %c0_i32 = arith.constant 0 : i32
    %c0_i32_0 = arith.constant 0 : i32
    return %arg0, %c0_i32 : i32, i32
  }
}

module attributes {stable_mosaic.version = 11 : i64} {
  func.func @_fused_c678_kernel(%arg0: i32, %arg1: memref<32x512xbf16, #tpu.memory_space<vmem>>, %arg2: memref<512x128xbf16, #tpu.memory_space<vmem>>, %arg3: memref<1x128xf32, #tpu.memory_space<vmem>>, %arg4: memref<128x128xbf16, #tpu.memory_space<vmem>>, %arg5: memref<1x128xf32, #tpu.memory_space<vmem>>, %arg6: memref<128x256xbf16, #tpu.memory_space<vmem>>, %arg7: memref<1x256xf32, #tpu.memory_space<vmem>>, %arg8: memref<32x256xbf16, #tpu.memory_space<vmem>>) attributes {dimension_semantics = [#tpu.dimension_semantics<parallel>], iteration_bounds = array<i64: 1>, scalar_prefetch = 0 : i64, scratch_operands = 0 : i64, tpu.core_type = #tpu.core_type<tc>, window_params = [{transform_indices = @transform_0, window_bounds = array<i64: 32, 512>}, {pipeline_mode = #tpu.pipeline_mode<synchronous>, transform_indices = @transform_1, window_bounds = array<i64: 512, 128>}, {pipeline_mode = #tpu.pipeline_mode<synchronous>, transform_indices = @transform_2, window_bounds = array<i64: 1, 128>}, {pipeline_mode = #tpu.pipeline_mode<synchronous>, transform_indices = @transform_3, window_bounds = array<i64: 128, 128>}, {pipeline_mode = #tpu.pipeline_mode<synchronous>, transform_indices = @transform_4, window_bounds = array<i64: 1, 128>}, {pipeline_mode = #tpu.pipeline_mode<synchronous>, transform_indices = @transform_5, window_bounds = array<i64: 128, 256>}, {pipeline_mode = #tpu.pipeline_mode<synchronous>, transform_indices = @transform_6, window_bounds = array<i64: 1, 256>}, {transform_indices = @transform_7, window_bounds = array<i64: 32, 256>}]} {
    %c0 = arith.constant 0 : index
    %c0_0 = arith.constant 0 : index
    %0 = vector.load %arg1[%c0, %c0_0] : memref<32x512xbf16, #tpu.memory_space<vmem>>, vector<32x512xbf16>
    %c0_1 = arith.constant 0 : index
    %c0_2 = arith.constant 0 : index
    %1 = vector.load %arg2[%c0_1, %c0_2] : memref<512x128xbf16, #tpu.memory_space<vmem>>, vector<512x128xbf16>
    %cst = arith.constant dense<0.000000e+00> : vector<32x128xf32>
    %2 = tpu.matmul %0, %1, %cst {dimension_numbers = #tpu.dot_dimension_numbers<[1], [0], [0], [1], [0, 0, 1, 1], [], []>} : vector<32x512xbf16>, vector<512x128xbf16>, vector<32x128xf32> -> vector<32x128xf32>
    %c0_3 = arith.constant 0 : index
    %c0_4 = arith.constant 0 : index
    %3 = vector.load %arg3[%c0_3, %c0_4] : memref<1x128xf32, #tpu.memory_space<vmem>>, vector<1x128xf32>
    %4 = vector.broadcast %3 : vector<1x128xf32> to vector<32x128xf32>
    %5 = arith.addf %2, %4 : vector<32x128xf32>
    %6 = arith.truncf %5 : vector<32x128xf32> to vector<32x128xbf16>
    %c0_5 = arith.constant 0 : index
    %c0_6 = arith.constant 0 : index
    %7 = vector.load %arg4[%c0_5, %c0_6] : memref<128x128xbf16, #tpu.memory_space<vmem>>, vector<128x128xbf16>
    %cst_7 = arith.constant dense<0.000000e+00> : vector<32x128xf32>
    %8 = tpu.matmul %6, %7, %cst_7 {dimension_numbers = #tpu.dot_dimension_numbers<[1], [0], [0], [1], [0, 0, 1, 1], [], []>} : vector<32x128xbf16>, vector<128x128xbf16>, vector<32x128xf32> -> vector<32x128xf32>
    %c0_8 = arith.constant 0 : index
    %c0_9 = arith.constant 0 : index
    %9 = vector.load %arg5[%c0_8, %c0_9] : memref<1x128xf32, #tpu.memory_space<vmem>>, vector<1x128xf32>
    %10 = vector.broadcast %9 : vector<1x128xf32> to vector<32x128xf32>
    %11 = arith.addf %8, %10 : vector<32x128xf32>
    %cst_10 = arith.constant 5.000000e-01 : f32
    %12 = vector.broadcast %cst_10 : f32 to vector<32x128xf32>
    %13 = arith.mulf %11, %12 : vector<32x128xf32>
    %14 = arith.mulf %11, %11 : vector<32x128xf32>
    %15 = arith.mulf %14, %11 : vector<32x128xf32>
    %cst_11 = arith.constant 4.471500e-02 : f32
    %16 = vector.broadcast %cst_11 : f32 to vector<32x128xf32>
    %17 = arith.mulf %15, %16 : vector<32x128xf32>
    %18 = arith.addf %11, %17 : vector<32x128xf32>
    %cst_12 = arith.constant 0.797884583 : f32
    %19 = vector.broadcast %cst_12 : f32 to vector<32x128xf32>
    %20 = arith.mulf %18, %19 : vector<32x128xf32>
    %21 = math.tanh %20 : vector<32x128xf32>
    %cst_13 = arith.constant 1.000000e+00 : f32
    %22 = vector.broadcast %cst_13 : f32 to vector<32x128xf32>
    %23 = arith.addf %21, %22 : vector<32x128xf32>
    %24 = arith.mulf %13, %23 : vector<32x128xf32>
    %25 = arith.addf %5, %24 : vector<32x128xf32>
    %26 = arith.truncf %25 : vector<32x128xf32> to vector<32x128xbf16>
    %c0_14 = arith.constant 0 : index
    %c0_15 = arith.constant 0 : index
    %27 = vector.load %arg6[%c0_14, %c0_15] : memref<128x256xbf16, #tpu.memory_space<vmem>>, vector<128x256xbf16>
    %cst_16 = arith.constant dense<0.000000e+00> : vector<32x256xf32>
    %28 = tpu.matmul %26, %27, %cst_16 {dimension_numbers = #tpu.dot_dimension_numbers<[1], [0], [0], [1], [0, 0, 1, 1], [], []>} : vector<32x128xbf16>, vector<128x256xbf16>, vector<32x256xf32> -> vector<32x256xf32>
    %c0_17 = arith.constant 0 : index
    %c0_18 = arith.constant 0 : index
    %29 = vector.load %arg7[%c0_17, %c0_18] : memref<1x256xf32, #tpu.memory_space<vmem>>, vector<1x256xf32>
    %30 = vector.broadcast %29 : vector<1x256xf32> to vector<32x256xf32>
    %31 = arith.addf %28, %30 : vector<32x256xf32>
    %cst_19 = arith.constant 5.000000e-01 : f32
    %32 = vector.broadcast %cst_19 : f32 to vector<32x256xf32>
    %33 = arith.mulf %31, %32 : vector<32x256xf32>
    %34 = arith.mulf %31, %31 : vector<32x256xf32>
    %35 = arith.mulf %34, %31 : vector<32x256xf32>
    %cst_20 = arith.constant 4.471500e-02 : f32
    %36 = vector.broadcast %cst_20 : f32 to vector<32x256xf32>
    %37 = arith.mulf %35, %36 : vector<32x256xf32>
    %38 = arith.addf %31, %37 : vector<32x256xf32>
    %cst_21 = arith.constant 0.797884583 : f32
    %39 = vector.broadcast %cst_21 : f32 to vector<32x256xf32>
    %40 = arith.mulf %38, %39 : vector<32x256xf32>
    %41 = math.tanh %40 : vector<32x256xf32>
    %cst_22 = arith.constant 1.000000e+00 : f32
    %42 = vector.broadcast %cst_22 : f32 to vector<32x256xf32>
    %43 = arith.addf %41, %42 : vector<32x256xf32>
    %44 = arith.mulf %33, %43 : vector<32x256xf32>
    %45 = arith.truncf %44 : vector<32x256xf32> to vector<32x256xbf16>
    %c0_23 = arith.constant 0 : index
    %c0_24 = arith.constant 0 : index
    %46 = vector.load %arg8[%c0_23, %c0_24] : memref<32x256xbf16, #tpu.memory_space<vmem>>, vector<32x256xbf16>
    tpu.vector_store %arg8[%c0_23, %c0_24], %45 {strides = array<i32>} : memref<32x256xbf16, #tpu.memory_space<vmem>>, vector<32x256xbf16>,
    return
  }
  func.func @transform_0(%arg0: i32) -> (i32, i32) {
    %c0_i32 = arith.constant 0 : i32
    %c0_i32_0 = arith.constant 0 : i32
    return %arg0, %c0_i32 : i32, i32
  }
  func.func @transform_1(%arg0: i32) -> (i32, i32) {
    %c0_i32 = arith.constant 0 : i32
    %c0_i32_0 = arith.constant 0 : i32
    %c0_i32_1 = arith.constant 0 : i32
    return %c0_i32, %c0_i32_0 : i32, i32
  }
  func.func @transform_2(%arg0: i32) -> (i32, i32) {
    %c0_i32 = arith.constant 0 : i32
    %c0_i32_0 = arith.constant 0 : i32
    %c0_i32_1 = arith.constant 0 : i32
    return %c0_i32, %c0_i32_0 : i32, i32
  }
  func.func @transform_3(%arg0: i32) -> (i32, i32) {
    %c0_i32 = arith.constant 0 : i32
    %c0_i32_0 = arith.constant 0 : i32
    %c0_i32_1 = arith.constant 0 : i32
    return %c0_i32, %c0_i32_0 : i32, i32
  }
  func.func @transform_4(%arg0: i32) -> (i32, i32) {
    %c0_i32 = arith.constant 0 : i32
    %c0_i32_0 = arith.constant 0 : i32
    %c0_i32_1 = arith.constant 0 : i32
    return %c0_i32, %c0_i32_0 : i32, i32
  }
  func.func @transform_5(%arg0: i32) -> (i32, i32) {
    %c0_i32 = arith.constant 0 : i32
    %c0_i32_0 = arith.constant 0 : i32
    %c0_i32_1 = arith.constant 0 : i32
    return %c0_i32, %c0_i32_0 : i32, i32
  }
  func.func @transform_6(%arg0: i32) -> (i32, i32) {
    %c0_i32 = arith.constant 0 : i32
    %c0_i32_0 = arith.constant 0 : i32
    %c0_i32_1 = arith.constant 0 : i32
    return %c0_i32, %c0_i32_0 : i32, i32
  }
  func.func @transform_7(%arg0: i32) -> (i32, i32) {
    %c0_i32 = arith.constant 0 : i32
    %c0_i32_0 = arith.constant 0 : i32
    return %arg0, %c0_i32 : i32, i32
  }
}

</mosaic_0001>

<bundles_post_ra>
// kernel: model_forward.2
= control target key start
LH: loop header
LB: loop body
LE: loop exit
PB: predicated region body
PF: predicated region fallthrough
CT: control target
= control target key end

     0   :  { %vm87_vm0 = vcmask 1045504   ;;  %vm68_vm1 = vcmask 97280   ;;  %s388_s0 = inlined_call_operand.vmem [shape: bf16[81,12], index: 0, kind: input, shape index: {}]   ;;  %s389_s1 = inlined_call_operand.vmem [shape: bf16[12,128], index: 1, kind: input, shape index: {}]   ;;  %s390_s2 = inlined_call_operand.vmem [shape: f32[1,128], index: 2, kind: input, shape index: {}]   ;;  %s391_s3 = inlined_call_operand.vmem [shape: bf16[81,128], index: 3, kind: output, shape index: {}]  }
   0x1   :  { %v269_v0 = vld [vmem:[%s389_s1] sm:$0xf]  ;;  %v283_v1 = vld [vmem:[%s389_s1] sm:$0x30]  ;;  %v278_v4 = vld [vmem:[%s388_s0 + $0x8] sm:$0xff] }
   0x2   :  { %v270_v2 = vor.u32 %v283_v1, %v269_v0  ;;  %v280_v5 = vld [vmem:[%s388_s0 + $0x18] sm:$0xff]  ;;  %v282_v6 = vld [vmem:[%s388_s0 + $0x28] sm:$0xff]  ;;  %v277_v7 = vld [vmem:[%s388_s0] sm:$0xff] }
   0x3   :  { %v279_v8 = vld [vmem:[%s388_s0 + $0x10] sm:$0xff]  ;;  %v281_v9 = vld [vmem:[%s388_s0 + $0x20] sm:$0xff] }
   0x4   :  { %v89_v3 = vsel %vm87_vm0, %v270_v2, 0  ;;  %v322_v12 = vld [vmem:[%s390_s2] ss:$0 sm:$0xff] }
   0x5   :  { %319 = vmatpush.bf16.msra.mxu1 %v89_v3  ;;  %320 = vmatpush.bf16.msra.mxu2 %v89_v3 }
   0x6   :  { %321 = vmatpush.bf16.msra.mxu3 %v89_v3  ;;  %98 = vmatpush.bf16.msra.mxu0 %v89_v3 }
   0x8   :  { %272 = vmatmul.msk.bf16.vlgmr.msra.gmra.mxu1 %vm68_vm1, %v278_v4  ;;  %274 = vmatmul.msk.bf16.vlgmr.msra.gmra.mxu2 %vm68_vm1, %v280_v5 }
   0x9   :  { %276 = vmatmul.msk.bf16.vlgmr.msra.gmra.mxu3 %vm68_vm1, %v282_v6  ;;  %271 = vmatmul.msk.bf16.vlgmr.msra.gmra.mxu0 %vm68_vm1, %v277_v7 }
  0x18   :  { %273 = vmatmul.msk.bf16.gmra.mxu1 %vm68_vm1, %v279_v8  ;;  %275 = vmatmul.msk.bf16.gmra.mxu2 %vm68_vm1, %v281_v9 }
  0x85   :  { %v105_v10 = vpop.f32.mrf.mxu1 }
  0x86   :  { %v100_v11 = vpop.f32.mrf.mxu0  ;;  %v106_v17 = vadd.f32 %v322_v12, %v105_v10 }
  0x87   :  { %v101_v16 = vadd.f32 %v322_v12, %v100_v11 }
  0x8b   :  { %v115_v13 = vpop.f32.mrf.mxu2 }
  0x8c   :  { %v125_v14 = vpop.f32.mrf.mxu3  ;;  %v116_v25 = vadd.f32 %v322_v12, %v115_v13 }
  0x8d   :  { %v107_v15 = vpop.f32.mrf.mxu1  ;;  %v126_v24 = vadd.f32 %v322_v12, %v125_v14 }
  0x8e   :  { %v108_v18 = vadd.f32 %v322_v12, %v107_v15  ;;  %v102_v19 = vpop.f32.mrf.mxu0 }
  0x8f   :  { %v103_v20 = vadd.f32 %v322_v12, %v102_v19 }
  0x90   :  { %v292_v21 = vpack.c.bf16 %v108_v18, %v106_v17 }
  0x91   :  { %v287_v22 = vpack.c.bf16 %v103_v20, %v101_v16 }
  0x92   :  { %314 = vst [vmem:[#allocation2 + $0x8] sm:$0xff] %v292_v21  }
  0x93   :  { %v117_v23 = vpop.f32.mrf.mxu2  ;;  %288 = vst [vmem:[#allocation2] sm:$0xff] %v287_v22  }
  0x94   :  { %v118_v26 = vadd.f32 %v322_v12, %v117_v23  ;;  %v127_v27 = vpop.f32.mrf.mxu3 }
  0x95   :  { %v110_v28 = vpop.f32.mrf.mxu1  ;;  %v128_v29 = vadd.f32 %v322_v12, %v127_v27 }
  0x96   :  { %v302_v30 = vpack.c.bf16 %v118_v26, %v116_v25  ;;  %v111_v36 = vadd.f32 %v322_v12, %v110_v28 }
  0x97   :  { %v312_v31 = vpack.c.bf16 %v128_v29, %v126_v24 }
  0x98   :  { %316 = vst [vmem:[#allocation2 + $0x18] sm:$0xff] %v302_v30  }
  0x99   :  { %v176_v32 = vld [vmem:[#allocation2 + $0x8] sm:$0xff]   ;;  %318 = vst [vmem:[#allocation2 + $0x28] sm:$0xff] %v312_v31  }
  0x9a   :  { %177 = vst [vmem:[%s391_s3 + $0x8] sm:$0xff] %v176_v32   ;;  %v172_v33 = vld [vmem:[#allocation2] sm:$0xff]  }
  0x9b   :  { %173 = vst [vmem:[%s391_s3] sm:$0xff] %v172_v33   ;;  %v120_v34 = vpop.f32.mrf.mxu2 }
  0x9c   :  { %v121_v42 = vadd.f32 %v322_v12, %v120_v34 }
  0x9d   :  { %v112_v35 = vpop.f32.mrf.mxu1 }
  0x9e   :  { %v113_v37 = vadd.f32 %v322_v12, %v112_v35 }
  0x9f   :  { %v184_v38 = vld [vmem:[#allocation2 + $0x18] sm:$0xff]  }
  0xa0   :  { %185 = vst [vmem:[%s391_s3 + $0x18] sm:$0xff] %v184_v38   ;;  %v192_v39 = vld [vmem:[#allocation2 + $0x28] sm:$0xf]  ;;  %v297_v40 = vpack.c.bf16 %v113_v37, %v111_v36 }
  0xa1   :  { %193 = vst [vmem:[%s391_s3 + $0x28] sm:$0xf] %v192_v39 }
  0xa2   :  { %315 = vst [vmem:[#allocation2 + $0x10] sm:$0xff] %v297_v40  }
  0xa3   :  { %v122_v41 = vpop.f32.mrf.mxu2 }
  0xa4   :  { %v123_v43 = vadd.f32 %v322_v12, %v122_v41 }
  0xa6   :  { %v307_v44 = vpack.c.bf16 %v123_v43, %v121_v42 }
  0xa8   :  { %317 = vst [vmem:[#allocation2 + $0x20] sm:$0xff] %v307_v44  }
  0xa9   :  { %v180_v45 = vld [vmem:[#allocation2 + $0x10] sm:$0xff]  }
  0xaa   :  { %181 = vst [vmem:[%s391_s3 + $0x10] sm:$0xff] %v180_v45  }
  0xaf   :  { %v188_v46 = vld [vmem:[#allocation2 + $0x20] sm:$0xff]  }
  0xb0   :  { %189 = vst [vmem:[%s391_s3 + $0x20] sm:$0xff] %v188_v46  }

// kernel: model_forward.3
= control target key start
LH: loop header
LB: loop body
LE: loop exit
PB: predicated region body
PF: predicated region fallthrough
CT: control target
= control target key end

     0   :  { %s1466_s1 = inlined_call_operand.vmem [shape: bf16[512,128], index: 1, kind: input, shape index: {}]   ;;  %s1467_s2 = inlined_call_operand.vmem [shape: f32[1,128], index: 2, kind: input, shape index: {}]   ;;  %s1468_s0 = inlined_call_operand.vmem [shape: bf16[25,512], index: 0, kind: input, shape index: {}]   ;;  %s1469_s3 = inlined_call_operand.vmem [shape: bf16[128,128], index: 3, kind: input, shape index: {}]   ;;  %s1470_s4 = inlined_call_operand.vmem [shape: f32[1,128], index: 4, kind: input, shape index: {}]   ;;  %s1471_s5 = inlined_call_operand.vmem [shape: bf16[128,256], index: 5, kind: input, shape index: {}]   ;;  %s1472_s6 = inlined_call_operand.vmem [shape: f32[1,256], index: 6, kind: input, shape index: {}]   ;;  %s1473_s7 = inlined_call_operand.vmem [shape: bf16[25,256], index: 7, kind: output, shape index: {}]  }
   0x1   :  { %v1036_v0 = vld [vmem:[%s1466_s1 + $0x38] sm:$0xff]  ;;  %v1035_v4 = vld [vmem:[%s1466_s1 + $0x30] sm:$0xff]  ;;  %v1034_v8 = vld [vmem:[%s1466_s1 + $0x28] sm:$0xff] }
   0x2   :  { %v1044_v1 = vld [vmem:[%s1466_s1 + $0x78] sm:$0xff]  ;;  %334 = vmatpush.bf16.msra.mxu0 %v1036_v0  ;;  %v1043_v5 = vld [vmem:[%s1466_s1 + $0x70] sm:$0xff]  ;;  %v1042_v9 = vld [vmem:[%s1466_s1 + $0x68] sm:$0xff] }
   0x3   :  { %v1052_v2 = vld [vmem:[%s1466_s1 + $0xb8] sm:$0xff]  ;;  %353 = vmatpush.bf16.msra.mxu1 %v1044_v1  ;;  %v1051_v6 = vld [vmem:[%s1466_s1 + $0xb0] sm:$0xff]  ;;  %v1050_v10 = vld [vmem:[%s1466_s1 + $0xa8] sm:$0xff] }
   0x4   :  { %v1060_v3 = vld [vmem:[%s1466_s1 + $0xf8] sm:$0xff]  ;;  %372 = vmatpush.bf16.msra.mxu2 %v1052_v2  ;;  %v1059_v7 = vld [vmem:[%s1466_s1 + $0xf0] sm:$0xff]  ;;  %v1058_v11 = vld [vmem:[%s1466_s1 + $0xe8] sm:$0xff] }
   0x5   :  { %391 = vmatpush.bf16.msra.mxu3 %v1060_v3  ;;  %v1033_v12 = vld [vmem:[%s1466_s1 + $0x20] sm:$0xff]  ;;  %v1032_v16 = vld [vmem:[%s1466_s1 + $0x18] sm:$0xff]  ;;  %v1031_v20 = vld [vmem:[%s1466_s1 + $0x10] sm:$0xff] }
   0x6   :  { %335 = vmatpush.bf16.msra.mxu0 %v1035_v4  ;;  %v1041_v13 = vld [vmem:[%s1466_s1 + $0x60] sm:$0xff]  ;;  %v1040_v17 = vld [vmem:[%s1466_s1 + $0x58] sm:$0xff]  ;;  %v1039_v21 = vld [vmem:[%s1466_s1 + $0x50] sm:$0xff] }
   0x7   :  { %354 = vmatpush.bf16.msra.mxu1 %v1043_v5  ;;  %v1049_v14 = vld [vmem:[%s1466_s1 + $0xa0] sm:$0xff]  ;;  %v1048_v18 = vld [vmem:[%s1466_s1 + $0x98] sm:$0xff]  ;;  %v1047_v22 = vld [vmem:[%s1466_s1 + $0x90] sm:$0xff] }
   0x8   :  { %373 = vmatpush.bf16.msra.mxu2 %v1051_v6  ;;  %v1057_v15 = vld [vmem:[%s1466_s1 + $0xe0] sm:$0xff]  ;;  %v1056_v19 = vld [vmem:[%s1466_s1 + $0xd8] sm:$0xff]  ;;  %v1055_v23 = vld [vmem:[%s1466_s1 + $0xd0] sm:$0xff] }
   0x9   :  { %392 = vmatpush.bf16.msra.mxu3 %v1059_v7  ;;  %v1030_v24 = vld [vmem:[%s1466_s1 + $0x8] sm:$0xff]  ;;  %v1029_v28 = vld [vmem:[%s1466_s1] sm:$0xff]  ;;  %v1023_v33 = vld [vmem:[%s1468_s0 + $0xc] sm:$0xf0] }
   0xa   :  { %336 = vmatpush.bf16.msra.mxu0 %v1034_v8  ;;  %v1038_v25 = vld [vmem:[%s1466_s1 + $0x48] sm:$0xff]  ;;  %v1037_v29 = vld [vmem:[%s1466_s1 + $0x40] sm:$0xff]  ;;  %v769_v35 = vld [vmem:[%s1468_s0 + $0x10] sm:$0xf0] }
   0xb   :  { %355 = vmatpush.bf16.msra.mxu1 %v1042_v9  ;;  %v1046_v26 = vld [vmem:[%s1466_s1 + $0x88] sm:$0xff]  ;;  %v1045_v30 = vld [vmem:[%s1466_s1 + $0x80] sm:$0xff]  ;;  %v1024_v37 = vld [vmem:[%s1468_s0 + $0x14] sm:$0xf0] }
   0xc   :  { %374 = vmatpush.bf16.msra.mxu2 %v1050_v10  ;;  %v1054_v27 = vld [vmem:[%s1466_s1 + $0xc8] sm:$0xff]  ;;  %v1053_v31 = vld [vmem:[%s1466_s1 + $0xc0] sm:$0xff]  ;;  %v777_v39 = vld [vmem:[%s1468_s0 + $0x18] sm:$0xf0] }
   0xd   :  { %393 = vmatpush.bf16.msra.mxu3 %v1058_v11  ;;  %v767_v32 = vld [vmem:[%s1468_s0] sm:$0xf]  ;;  %v1021_v34 = vld [vmem:[%s1468_s0 + $0x4] sm:$0xf]  ;;  %v775_v36 = vld [vmem:[%s1468_s0 + $0x8] sm:$0xf] }
   0xe   :  { %337 = vmatpush.bf16.msra.mxu0 %v1033_v12  ;;  %v1022_v38 = vld [vmem:[%s1468_s0 + $0xc] sm:$0xf]  ;;  %v1068_v40 = vld [vmem:[%s1469_s3 + $0x38] sm:$0xff]  ;;  %v768_v41 = vor.u32 %v1023_v33, %v767_v32  ;;  %v772_v42 = vor.u32 %v1021_v34, %v769_v35  ;;  %v776_v43 = vor.u32 %v1024_v37, %v775_v36  ;;  %v1067_v45 = vld [vmem:[%s1469_s3 + $0x30] sm:$0xff] }
   0xf   :  { %356 = vmatpush.bf16.msra.mxu1 %v1041_v13  ;;  %v780_v44 = vor.u32 %v1022_v38, %v777_v39  ;;  %v1066_v46 = vld [vmem:[%s1469_s3 + $0x28] sm:$0xff]  ;;  %v783_v47 = vld [vmem:[%s1468_s0 + $0x20] sm:$0xf]  ;;  %v1027_v48 = vld [vmem:[%s1468_s0 + $0x2c] sm:$0xf0] }
  0x10   :  { %375 = vmatpush.bf16.msra.mxu2 %v1049_v14  ;;  %v1025_v49 = vld [vmem:[%s1468_s0 + $0x24] sm:$0xf]  ;;  %v785_v50 = vld [vmem:[%s1468_s0 + $0x30] sm:$0xf0]  ;;  %v791_v51 = vld [vmem:[%s1468_s0 + $0x28] sm:$0xf]  ;;  %v784_v55 = vor.u32 %v1027_v48, %v783_v47 }
  0x11   :  { %394 = vmatpush.bf16.msra.mxu3 %v1057_v15  ;;  %v1028_v52 = vld [vmem:[%s1468_s0 + $0x34] sm:$0xf0]  ;;  %v1026_v53 = vld [vmem:[%s1468_s0 + $0x2c] sm:$0xf]  ;;  %v793_v54 = vld [vmem:[%s1468_s0 + $0x38] sm:$0xf0]  ;;  %v788_v56 = vor.u32 %v1025_v49, %v785_v50 }
  0x12   :  { %338 = vmatpush.bf16.msra.mxu0 %v1032_v16  ;;  %v792_v57 = vor.u32 %v1028_v52, %v791_v51  ;;  %v796_v58 = vor.u32 %v1026_v53, %v793_v54  ;;  %v1065_v59 = vld [vmem:[%s1469_s3 + $0x20] sm:$0xff]  ;;  %v1064_v60 = vld [vmem:[%s1469_s3 + $0x18] sm:$0xff]  ;;  %v1063_v61 = vld [vmem:[%s1469_s3 + $0x10] sm:$0xff] }
  0x13   :  { %357 = vmatpush.bf16.msra.mxu1 %v1040_v17  ;;  %v1062_v62 = vld [vmem:[%s1469_s3 + $0x8] sm:$0xff]  ;;  %v1061_v63 = vld [vmem:[%s1469_s3] sm:$0xff]  ;;  %v1015_v35 = vld [vmem:[%s1471_s5 + $0x70] sm:$0xf] }
  0x14   :  { %376 = vmatpush.bf16.msra.mxu2 %v1048_v18  ;;  %v1093_v2 = vld [vmem:[%s1467_s2] ss:$0 sm:$0xff]  ;;  %v1084_v36 = vld [vmem:[%s1471_s5 + $0x74] sm:$0xf0]  ;;  %v1083_v37 = vld [vmem:[%s1471_s5 + $0x74] sm:$0xf] }
  0x15   :  { %395 = vmatpush.bf16.msra.mxu3 %v1056_v19  ;;  %v1016_v38 = vor.u32 %v1084_v36, %v1015_v35  ;;  %v1017_v39 = vld [vmem:[%s1471_s5 + $0x78] sm:$0xf0]  ;;  %v999_v47 = vld [vmem:[%s1471_s5 + $0x50] sm:$0xf]  ;;  %v1080_v48 = vld [vmem:[%s1471_s5 + $0x54] sm:$0xf0] }
  0x16   :  { %339 = vmatpush.bf16.msra.mxu0 %v1031_v20  ;;  %v1079_v49 = vld [vmem:[%s1471_s5 + $0x54] sm:$0xf]  ;;  %v1000_v50 = vor.u32 %v1080_v48, %v999_v47  ;;  %v1001_v51 = vld [vmem:[%s1471_s5 + $0x58] sm:$0xf0]  ;;  %v991_v53 = vld [vmem:[%s1471_s5 + $0x40] sm:$0xf] }
  0x17   :  { %358 = vmatpush.bf16.msra.mxu1 %v1039_v21  ;;  %v1004_v52 = vor.u32 %v1079_v49, %v1001_v51  ;;  %v1078_v54 = vld [vmem:[%s1471_s5 + $0x44] sm:$0xf0] }
  0x18   :  { %377 = vmatpush.bf16.msra.mxu2 %v1047_v22 }
  0x19   :  { %396 = vmatpush.bf16.msra.mxu3 %v1055_v23 }
  0x1a   :  { %340 = vmatpush.bf16.msra.mxu0 %v1030_v24 }
  0x1b   :  { %359 = vmatpush.bf16.msra.mxu1 %v1038_v25 }
  0x1c   :  { %378 = vmatpush.bf16.msra.mxu2 %v1046_v26 }
  0x1d   :  { %397 = vmatpush.bf16.msra.mxu3 %v1054_v27 }
  0x1e   :  { %341 = vmatpush.bf16.msra.mxu0 %v1029_v28 }
  0x1f   :  { %360 = vmatpush.bf16.msra.mxu1 %v1037_v29 }
  0x20   :  { %379 = vmatpush.bf16.msra.mxu2 %v1045_v30 }
  0x21   :  { %398 = vmatpush.bf16.msra.mxu3 %v1053_v31  ;;  %342 = vmatmul.bf16.vlgmr.msra.gmra.mxu0 %v768_v41  ;;  %v1007_v41 = vld [vmem:[%s1471_s5 + $0x60] sm:$0xf] }
  0x22   :  { %480 = vmatpush.bf16.msrb.mxu0 %v1068_v40  ;;  %361 = vmatmul.bf16.vlgmr.msra.gmra.mxu1 %v772_v42  ;;  %v1082_v42 = vld [vmem:[%s1471_s5 + $0x64] sm:$0xf0] }
  0x23   :  { %380 = vmatmul.bf16.vlgmr.msra.gmra.mxu2 %v776_v43  ;;  %643 = vmatpush.bf16.msrb.mxu1 %v1016_v38  ;;  %v1081_v43 = vld [vmem:[%s1471_s5 + $0x64] sm:$0xf] }
  0x24   :  { %399 = vmatmul.bf16.vlgmr.msra.gmra.mxu3 %v780_v44  ;;  %v1008_v44 = vor.u32 %v1082_v42, %v1007_v41 }
  0x25   :  { %1085 = vmatpush.bf16.msrb.mxu3 %v1068_v40  ;;  %v1020_v40 = vor.u32 %v1083_v37, %v1017_v39 }
  0x26   :  { %481 = vmatpush.bf16.msrb.mxu0 %v1067_v45 }
  0x27   :  { %662 = vmatpush.bf16.msrb.mxu2 %v1020_v40  ;;  %644 = vmatpush.bf16.msrb.mxu1 %v1008_v44 }
  0x29   :  { %1086 = vmatpush.bf16.msrb.mxu3 %v1067_v45  ;;  %v1009_v45 = vld [vmem:[%s1471_s5 + $0x68] sm:$0xf0] }
  0x2a   :  { %482 = vmatpush.bf16.msrb.mxu0 %v1066_v46 }
  0x2b   :  { %645 = vmatpush.bf16.msrb.mxu1 %v1000_v50 }
  0x2d   :  { %1087 = vmatpush.bf16.msrb.mxu3 %v1066_v46  ;;  %v1012_v46 = vor.u32 %v1081_v43, %v1009_v45 }
  0x2e   :  { %483 = vmatpush.bf16.msrb.mxu0 %v1065_v59 }
  0x2f   :  { %663 = vmatpush.bf16.msrb.mxu2 %v1012_v46 }
  0x31   :  { %347 = vmatmul.bf16.gmra.mxu0 %v784_v55  ;;  %1088 = vmatpush.bf16.msrb.mxu3 %v1065_v59  ;;  %v1077_v55 = vld [vmem:[%s1471_s5 + $0x44] sm:$0xf]  ;;  %v983_v59 = vld [vmem:[%s1471_s5 + $0x30] sm:$0xf] }
  0x32   :  { %366 = vmatmul.bf16.gmra.mxu1 %v788_v56  ;;  %484 = vmatpush.bf16.msrb.mxu0 %v1064_v60  ;;  %v992_v56 = vor.u32 %v1078_v54, %v991_v53 }
  0x33   :  { %385 = vmatmul.bf16.gmra.mxu2 %v792_v57  ;;  %v993_v57 = vld [vmem:[%s1471_s5 + $0x48] sm:$0xf0] }
  0x34   :  { %404 = vmatmul.bf16.gmra.mxu3 %v796_v58  ;;  %664 = vmatpush.bf16.msrb.mxu2 %v1004_v52  ;;  %v996_v58 = vor.u32 %v1077_v55, %v993_v57 }
  0x35   :  { %1089 = vmatpush.bf16.msrb.mxu3 %v1064_v60  ;;  %646 = vmatpush.bf16.msrb.mxu1 %v992_v56  ;;  %v1076_v60 = vld [vmem:[%s1471_s5 + $0x34] sm:$0xf0] }
  0x36   :  { %485 = vmatpush.bf16.msrb.mxu0 %v1063_v61 }
  0x38   :  { %665 = vmatpush.bf16.msrb.mxu2 %v996_v58 }
  0x39   :  { %1090 = vmatpush.bf16.msrb.mxu3 %v1063_v61  ;;  %v1075_v61 = vld [vmem:[%s1471_s5 + $0x34] sm:$0xf] }
  0x3a   :  { %486 = vmatpush.bf16.msrb.mxu0 %v1062_v62 }
  0x3d   :  { %1091 = vmatpush.bf16.msrb.mxu3 %v1062_v62  ;;  %v984_v62 = vor.u32 %v1076_v60, %v983_v59 }
  0x3e   :  { %487 = vmatpush.bf16.msrb.mxu0 %v1061_v63 }
  0x3f   :  { %647 = vmatpush.bf16.msrb.mxu1 %v984_v62 }
  0x41   :  { %1092 = vmatpush.bf16.msrb.mxu3 %v1061_v63  ;;  %v985_v63 = vld [vmem:[%s1471_s5 + $0x38] sm:$0xf0] }
  0x9e   :  { %v343_v0 = vpop.f32.mrf.mxu0 }
  0x9f   :  { %v362_v1 = vpop.f32.mrf.mxu1  ;;  %v344_v3 = vadd.f32 %v1093_v2, %v343_v0  ;;  %v988_v0 = vor.u32 %v1075_v61, %v985_v63 }
  0xa1   :  { %v363_v8 = vadd.f32 %v362_v1, %v344_v3  ;;  %666 = vmatpush.bf16.msrb.mxu2 %v988_v0  ;;  %v975_v1 = vld [vmem:[%s1471_s5 + $0x20] sm:$0xf]  ;;  %v1073_v3 = vld [vmem:[%s1471_s5 + $0x24] sm:$0xf] }
  0xa6   :  { %v381_v4 = vpop.f32.mrf.mxu2  ;;  %v345_v6 = vpop.f32.mrf.mxu0 }
  0xa7   :  { %v400_v5 = vpop.f32.mrf.mxu3  ;;  %v364_v7 = vpop.f32.mrf.mxu1  ;;  %v346_v9 = vadd.f32 %v1093_v2, %v345_v6  ;;  %v382_v10 = vadd.f32 %v381_v4, %v363_v8  ;;  %v1072_v8 = vld [vmem:[%s1471_s5 + $0x14] sm:$0xf0] }
  0xa9   :  { %v365_v11 = vadd.f32 %v364_v7, %v346_v9  ;;  %v1330_v16 = vadd.f32 %v400_v5, %v382_v10  ;;  %v977_v5 = vld [vmem:[%s1471_s5 + $0x28] sm:$0xf0]  ;;  %v967_v7 = vld [vmem:[%s1471_s5 + $0x10] sm:$0xf]  ;;  %v1071_v9 = vld [vmem:[%s1471_s5 + $0x14] sm:$0xf] }
  0xaa   :  { %v980_v6 = vor.u32 %v1073_v3, %v977_v5  ;;  %v968_v10 = vor.u32 %v1072_v8, %v967_v7  ;;  %v557_v8 = vld [vmem:[%s1472_s6] sm:$0x3] }
  0xac   :  { %667 = vmatpush.bf16.msrb.mxu2 %v980_v6 }
  0xae   :  { %v383_v12 = vpop.f32.mrf.mxu2  ;;  %v348_v15 = vpop.f32.mrf.mxu0 }
  0xaf   :  { %v402_v13 = vpop.f32.mrf.mxu3  ;;  %v384_v14 = vadd.f32 %v383_v12, %v365_v11  ;;  %v367_v18 = vpop.f32.mrf.mxu1  ;;  %v349_v20 = vadd.f32 %v1093_v2, %v348_v15  ;;  %v969_v11 = vld [vmem:[%s1471_s5 + $0x18] sm:$0xf0]  ;;  %v1070_v15 = vld [vmem:[%s1471_s5 + $0x4] sm:$0xf0] }
  0xb0   :  { %v972_v12 = vor.u32 %v1071_v9, %v969_v11  ;;  %v559_v9 = vperm.slane %v557_v8, 0 }
  0xb1   :  { %v1332_v17 = vadd.f32 %v402_v13, %v384_v14  ;;  %v368_v24 = vadd.f32 %v367_v18, %v349_v20  ;;  %v1094_v13 = vld [vmem:[%s1470_s4] ss:$0 sm:$0xff]  ;;  %v1069_v18 = vld [vmem:[%s1471_s5 + $0x4] sm:$0xf]  ;;  %v961_v20 = vld [vmem:[%s1471_s5 + $0x8] sm:$0xf0] }
  0xb2   :  { %668 = vmatpush.bf16.msrb.mxu2 %v972_v12  ;;  %v959_v14 = vld [vmem:[%s1471_s5] sm:$0xf] }
  0xb3   :  { %v410_v19 = vpack.c.bf16 %v1332_v17, %v1330_v16 }
  0xb5   :  { %488 = vmatmul.bf16.vlgmr.msrb.gmra.mxu0 %v410_v19  ;;  %v960_v19 = vor.u32 %v1070_v15, %v959_v14 }
  0xb6   :  { %v386_v21 = vpop.f32.mrf.mxu2  ;;  %v350_v23 = vpop.f32.mrf.mxu0 }
  0xb7   :  { %v405_v22 = vpop.f32.mrf.mxu3  ;;  %v351_v25 = vadd.f32 %v1093_v2, %v350_v23  ;;  %v369_v26 = vpop.f32.mrf.mxu1  ;;  %v387_v27 = vadd.f32 %v386_v21, %v368_v24  ;;  %v1074_v2 = vld [vmem:[%s1471_s5 + $0x24] sm:$0xf0] }
  0xb8   :  { %v976_v4 = vor.u32 %v1074_v2, %v975_v1 }
  0xb9   :  { %v370_v28 = vadd.f32 %v369_v26, %v351_v25  ;;  %v1336_v32 = vadd.f32 %v405_v22, %v387_v27  ;;  %v964_v22 = vor.u32 %v1069_v18, %v961_v20 }
  0xba   :  { %648 = vmatpush.bf16.msrb.mxu1 %v976_v4 }
  0xbb   :  { %669 = vmatpush.bf16.msrb.mxu2 %v964_v22 }
  0xbe   :  { %v388_v29 = vpop.f32.mrf.mxu2  ;;  %649 = vmatpush.bf16.msrb.mxu1 %v968_v10 }
  0xbf   :  { %v389_v30 = vadd.f32 %v388_v29, %v370_v28  ;;  %v407_v31 = vpop.f32.mrf.mxu3 }
  0xc1   :  { %v1338_v33 = vadd.f32 %v407_v31, %v389_v30 }
  0xc2   :  { %650 = vmatpush.bf16.msrb.mxu1 %v960_v19 }
  0xc3   :  { %v411_v34 = vpack.c.bf16 %v1338_v33, %v1336_v32 }
  0xc5   :  { %493 = vmatmul.bf16.vlgmr.msrb.gmra.mxu3 %v411_v34 }
 0x132   :  { %v489_v21 = vpop.f32.mrf.mxu0 }
 0x133   :  { %v490_v23 = vadd.f32 %v1094_v13, %v489_v21 }
 0x135   :  { %v503_v24 = vmul.f32 %v490_v23, %v490_v23  ;;  %v499_v43 = vmul.f32 0.5, %v490_v23 }
 0x137   :  { %v507_v25 = vmul.f32 %v503_v24, %v490_v23 }
 0x139   :  { %v511_v26 = vmul.f32 0.044715, %v507_v25 }
 0x13a   :  { %v491_v27 = vpop.f32.mrf.mxu0 }
 0x13b   :  { %v515_v28 = vadd.f32 %v511_v26, %v490_v23  ;;  %v492_v29 = vadd.f32 %v1094_v13, %v491_v27 }
 0x13d   :  { %v519_v30 = vmul.f32 0.7978846, %v515_v28  ;;  %v504_v31 = vmul.f32 %v492_v29, %v492_v29  ;;  %v500_v46 = vmul.f32 0.5, %v492_v29 }
 0x13f   :  { %v508_v34 = vmul.f32 %v504_v31, %v492_v29  ;;  %1095 = vtanh.f32 %v519_v30 }
 0x141   :  { %v512_v35 = vmul.f32 0.044715, %v508_v34 }
 0x143   :  { %v516_v36 = vadd.f32 %v512_v35, %v492_v29 }
 0x145   :  { %v520_v37 = vmul.f32 0.7978846, %v516_v36  ;;  %v1096_v38 = vpop.eup %1095 }
 0x146   :  { %v527_v41 = vadd.f32 1.0, %v1096_v38 }
 0x147   :  { %1097 = vtanh.f32 %v520_v37 }
 0x148   :  { %v494_v39 = vpop.f32.mrf.mxu3  ;;  %v531_v48 = vmul.f32 %v527_v41, %v499_v43 }
 0x149   :  { %v495_v40 = vadd.f32 %v1094_v13, %v494_v39 }
 0x14a   :  { %v535_v54 = vadd.f32 %v531_v48, %v1330_v16 }
 0x14b   :  { %v505_v42 = vmul.f32 %v495_v40, %v495_v40  ;;  %v501_v1 = vmul.f32 0.5, %v495_v40 }
 0x14d   :  { %v1098_v44 = vpop.eup %1097  ;;  %v509_v45 = vmul.f32 %v505_v42, %v495_v40 }
 0x14e   :  { %v528_v47 = vadd.f32 1.0, %v1098_v44 }
 0x14f   :  { %v513_v49 = vmul.f32 0.044715, %v509_v45 }
 0x150   :  { %v496_v50 = vpop.f32.mrf.mxu3  ;;  %v532_v51 = vmul.f32 %v528_v47, %v500_v46 }
 0x151   :  { %v517_v52 = vadd.f32 %v513_v49, %v495_v40  ;;  %v497_v53 = vadd.f32 %v1094_v13, %v496_v50  ;;  %v1448_v13 = vperm.slane %v557_v8, 1 }
 0x152   :  { %v536_v55 = vadd.f32 %v532_v51, %v1332_v17 }
 0x153   :  { %v521_v56 = vmul.f32 0.7978846, %v517_v52  ;;  %v506_v57 = vmul.f32 %v497_v53, %v497_v53  ;;  %v502_v3 = vmul.f32 0.5, %v497_v53 }
 0x154   :  { %v539_v58 = vpack.c.bf16 %v536_v55, %v535_v54 }
 0x155   :  { %v510_v59 = vmul.f32 %v506_v57, %v497_v53  ;;  %1099 = vtanh.f32 %v521_v56 }
 0x156   :  { %651 = vmatmul.bf16.vlgmr.msrb.gmra.mxu1 %v539_v58  ;;  %670 = vmatmul.bf16.vlgmr.msrb.gmra.mxu2 %v539_v58 }
 0x157   :  { %v514_v60 = vmul.f32 0.044715, %v510_v59 }
 0x159   :  { %v518_v61 = vadd.f32 %v514_v60, %v497_v53 }
 0x15b   :  { %v522_v62 = vmul.f32 0.7978846, %v518_v61  ;;  %v1100_v63 = vpop.eup %1099 }
 0x15c   :  { %v529_v0 = vadd.f32 1.0, %v1100_v63 }
 0x15d   :  { %1101 = vtanh.f32 %v522_v62 }
 0x15e   :  { %v533_v16 = vmul.f32 %v529_v0, %v501_v1 }
 0x160   :  { %v537_v17 = vadd.f32 %v533_v16, %v1336_v32 }
 0x163   :  { %v1102_v2 = vpop.eup %1101 }
 0x164   :  { %v530_v4 = vadd.f32 1.0, %v1102_v2 }
 0x166   :  { %v534_v5 = vmul.f32 %v530_v4, %v502_v3 }
 0x168   :  { %v538_v6 = vadd.f32 %v534_v5, %v1338_v33 }
 0x16a   :  { %v540_v7 = vpack.c.bf16 %v538_v6, %v537_v17 }
 0x16c   :  { %656 = vmatmul.bf16.gmra.mxu1 %v540_v7  ;;  %675 = vmatmul.bf16.gmra.mxu2 %v540_v7 }
 0x1d3   :  { %v652_v10 = vpop.f32.mrf.mxu1 }
 0x1d4   :  { %v653_v11 = vadd.f32 %v652_v10, %v559_v9 }
 0x1d6   :  { %v689_v12 = vmul.f32 %v653_v11, %v653_v11  ;;  %v681_v47 = vmul.f32 0.5, %v653_v11 }
 0x1d8   :  { %v697_v14 = vmul.f32 %v689_v12, %v653_v11 }
 0x1d9   :  { %v671_v15 = vpop.f32.mrf.mxu2 }
 0x1da   :  { %v705_v18 = vmul.f32 0.044715, %v697_v14  ;;  %v672_v32 = vadd.f32 %v671_v15, %v1448_v13 }
 0x1db   :  { %v654_v19 = vpop.f32.mrf.mxu1 }
 0x1dc   :  { %v713_v33 = vadd.f32 %v705_v18, %v653_v11  ;;  %v690_v20 = vmul.f32 %v672_v32, %v672_v32  ;;  %v655_v21 = vadd.f32 %v654_v19, %v559_v9  ;;  %v682_v48 = vmul.f32 0.5, %v672_v32 }
 0x1de   :  { %v721_v22 = vmul.f32 0.7978846, %v713_v33  ;;  %v698_v23 = vmul.f32 %v690_v20, %v672_v32  ;;  %v691_v24 = vmul.f32 %v655_v21, %v655_v21  ;;  %v683_v3 = vmul.f32 0.5, %v655_v21 }
 0x1e0   :  { %v706_v25 = vmul.f32 0.044715, %v698_v23  ;;  %v699_v26 = vmul.f32 %v691_v24, %v655_v21  ;;  %1103 = vtanh.f32 %v721_v22 }
 0x1e1   :  { %v673_v27 = vpop.f32.mrf.mxu2 }
 0x1e2   :  { %v714_v28 = vadd.f32 %v706_v25, %v672_v32  ;;  %v707_v29 = vmul.f32 0.044715, %v699_v26  ;;  %v674_v30 = vadd.f32 %v673_v27, %v1448_v13 }
 0x1e4   :  { %v722_v31 = vmul.f32 0.7978846, %v714_v28  ;;  %v715_v34 = vadd.f32 %v707_v29, %v655_v21  ;;  %v692_v35 = vmul.f32 %v674_v30, %v674_v30  ;;  %v684_v4 = vmul.f32 0.5, %v674_v30 }
 0x1e6   :  { %1105 = vtanh.f32 %v722_v31  ;;  %v723_v36 = vmul.f32 0.7978846, %v715_v34  ;;  %v700_v37 = vmul.f32 %v692_v35, %v674_v30  ;;  %v1104_v38 = vpop.eup %1103 }
 0x1e7   :  { %v737_v43 = vadd.f32 1.0, %v1104_v38 }
 0x1e8   :  { %v708_v39 = vmul.f32 0.044715, %v700_v37  ;;  %1107 = vtanh.f32 %v723_v36 }
 0x1e9   :  { %v657_v40 = vpop.f32.mrf.mxu1  ;;  %v745_v51 = vmul.f32 %v737_v43, %v681_v47 }
 0x1ea   :  { %v716_v41 = vadd.f32 %v708_v39, %v674_v30  ;;  %v658_v42 = vadd.f32 %v657_v40, %v559_v9 }
 0x1ec   :  { %v1106_v44 = vpop.eup %1105  ;;  %v724_v45 = vmul.f32 0.7978846, %v716_v41  ;;  %v693_v46 = vmul.f32 %v658_v42, %v658_v42  ;;  %v685_v25 = vmul.f32 0.5, %v658_v42 }
 0x1ed   :  { %v738_v49 = vadd.f32 1.0, %v1106_v44 }
 0x1ee   :  { %1109 = vtanh.f32 %v724_v45  ;;  %v701_v50 = vmul.f32 %v693_v46, %v658_v42  ;;  %v1108_v54 = vpop.eup %1107 }
 0x1ef   :  { %v746_v52 = vmul.f32 %v738_v49, %v682_v48  ;;  %v676_v53 = vpop.f32.mrf.mxu2  ;;  %v739_v62 = vadd.f32 1.0, %v1108_v54 }
 0x1f0   :  { %v709_v55 = vmul.f32 0.044715, %v701_v50  ;;  %v677_v56 = vadd.f32 %v676_v53, %v1448_v13 }
 0x1f1   :  { %v753_v57 = vpack.c.bf16 %v746_v52, %v745_v51  ;;  %v659_v58 = vpop.f32.mrf.mxu1  ;;  %v747_v6 = vmul.f32 %v739_v62, %v683_v3 }
 0x1f2   :  { %v717_v59 = vadd.f32 %v709_v55, %v658_v42  ;;  %v694_v60 = vmul.f32 %v677_v56, %v677_v56  ;;  %v660_v61 = vadd.f32 %v659_v58, %v559_v9 }
 0x1f3   :  { %757 = vst [vmem:[%s1473_s7] sm:$0xff] %v753_v57 }
 0x1f4   :  { %v1110_v63 = vpop.eup %1109  ;;  %v725_v0 = vmul.f32 0.7978846, %v717_v59  ;;  %v702_v1 = vmul.f32 %v694_v60, %v677_v56  ;;  %v695_v2 = vmul.f32 %v660_v61, %v660_v61  ;;  %v687_v35 = vmul.f32 0.5, %v660_v61 }
 0x1f5   :  { %v740_v16 = vadd.f32 1.0, %v1110_v63 }
 0x1f6   :  { %v710_v5 = vmul.f32 0.044715, %v702_v1  ;;  %v703_v17 = vmul.f32 %v695_v2, %v660_v61  ;;  %1111 = vtanh.f32 %v725_v0 }
 0x1f7   :  { %v748_v7 = vmul.f32 %v740_v16, %v684_v4  ;;  %v678_v8 = vpop.f32.mrf.mxu2 }
 0x1f8   :  { %v718_v10 = vadd.f32 %v710_v5, %v677_v56  ;;  %v711_v9 = vmul.f32 0.044715, %v703_v17  ;;  %v679_v11 = vadd.f32 %v678_v8, %v1448_v13  ;;  %v686_v13 = vmul.f32 0.5, %v677_v56 }
 0x1f9   :  { %v754_v12 = vpack.c.bf16 %v748_v7, %v747_v6 }
 0x1fa   :  { %v726_v14 = vmul.f32 0.7978846, %v718_v10  ;;  %v719_v15 = vadd.f32 %v711_v9, %v660_v61  ;;  %v696_v18 = vmul.f32 %v679_v11, %v679_v11  ;;  %v688_v36 = vmul.f32 0.5, %v679_v11 }
 0x1fb   :  { %758 = vst [vmem:[%s1473_s7 + $0x8] sm:$0xff] %v754_v12 }
 0x1fc   :  { %1113 = vtanh.f32 %v726_v14  ;;  %v727_v32 = vmul.f32 0.7978846, %v719_v15  ;;  %v704_v19 = vmul.f32 %v696_v18, %v679_v11  ;;  %v1112_v33 = vpop.eup %1111 }
 0x1fd   :  { %v741_v22 = vadd.f32 1.0, %v1112_v33 }
 0x1fe   :  { %v712_v20 = vmul.f32 0.044715, %v704_v19  ;;  %1115 = vtanh.f32 %v727_v32 }
 0x1ff   :  { %v749_v27 = vmul.f32 %v741_v22, %v685_v25 }
 0x200   :  { %v720_v21 = vadd.f32 %v712_v20, %v679_v11 }
 0x202   :  { %v1114_v23 = vpop.eup %1113  ;;  %v728_v24 = vmul.f32 0.7978846, %v720_v21 }
 0x203   :  { %v742_v26 = vadd.f32 1.0, %v1114_v23 }
 0x204   :  { %1117 = vtanh.f32 %v728_v24  ;;  %v1116_v29 = vpop.eup %1115 }
 0x205   :  { %v750_v28 = vmul.f32 %v742_v26, %v686_v13  ;;  %v743_v31 = vadd.f32 1.0, %v1116_v29 }
 0x207   :  { %v755_v30 = vpack.c.bf16 %v750_v28, %v749_v27  ;;  %v751_v38 = vmul.f32 %v743_v31, %v687_v35 }
 0x209   :  { %759 = vst [vmem:[%s1473_s7 + $0x10] sm:$0xff] %v755_v30 }
 0x20a   :  { %v1118_v34 = vpop.eup %1117 }
 0x20b   :  { %v744_v37 = vadd.f32 1.0, %v1118_v34 }
 0x20d   :  { %v752_v39 = vmul.f32 %v744_v37, %v688_v36 }
 0x20f   :  { %v756_v40 = vpack.c.bf16 %v752_v39, %v751_v38 }
 0x211   :  { %760 = vst [vmem:[%s1473_s7 + $0x18] sm:$0xff] %v756_v40 }

</bundles_post_ra>
